<compile_context>
chip_gen: v7x
topology: tpu7x:2x2x1
jax: 0.10.0
libtpu: 0.0.40
codegen_flags: <defaults>
</compile_context>

<pallas_src>
import functools

import jax
import jax.numpy as jnp
from jax import lax
from jax.experimental import pallas as pl
from jax.experimental.pallas import tpu as pltpu


# ---------------------------------------------------------------------------
# Kernels
# ---------------------------------------------------------------------------

def _fam_single_pass_kernel(gamma_ref, x_ref, o_ref, *, compute_dtype,
                            approx_recip):
    """One grid step per batch image: whole (C, HW) slab resident in VMEM."""
    x = x_ref[0]                                        # (C, HW) f32
    xm = x.astype(compute_dtype)
    # energy = X @ X^T as a contraction over HW (feeds the MXU directly).
    energy = lax.dot_general(
        xm, xm, dimension_numbers=(((1,), (1,)), ((), ())),
        preferred_element_type=jnp.float32)             # (C, C) f32
    # softmax(max(E) - E) == exp(min(E) - E) / sum(exp(min(E) - E))
    e = jnp.exp(jnp.min(energy, axis=-1, keepdims=True) - energy)
    denom = jnp.sum(e, axis=-1, keepdims=True)
    # Fold gamma into the attention once, in f32, before the operand cast.
    att = (gamma_ref[0] * e) * pl.reciprocal(denom, approx=approx_recip)
    out = jnp.dot(att.astype(compute_dtype), xm,
                  preferred_element_type=jnp.float32)
    o_ref[0] = (out + x).astype(o_ref.dtype)


def _fam_gram_kernel(gamma_ref, x_ref, att_ref, energy_acc, *, compute_dtype,
                     approx_recip):
    """grid=(B, n_chunks): accumulate the Gram matrix over HW chunks; softmax
    (gamma folded in) at the tail of the last chunk."""
    k = pl.program_id(1)

    @pl.when(k == 0)
    def _init():
        energy_acc[...] = jnp.zeros_like(energy_acc)

    xm = x_ref[0].astype(compute_dtype)                 # (C, hw_chunk)
    energy_acc[...] += lax.dot_general(
        xm, xm, dimension_numbers=(((1,), (1,)), ((), ())),
        preferred_element_type=jnp.float32)

    @pl.when(k == pl.num_programs(1) - 1)
    def _softmax():
        energy = energy_acc[...]
        e = jnp.exp(jnp.min(energy, axis=-1, keepdims=True) - energy)
        denom = jnp.sum(e, axis=-1, keepdims=True)
        att = (gamma_ref[0] * e) * pl.reciprocal(denom, approx=approx_recip)
        att_ref[0] = att.astype(att_ref.dtype)


def _fam_apply_kernel(att_ref, x_ref, o_ref, *, compute_dtype):
    """grid=(B, n_chunks), fully parallel: out = (gamma*attention) @ X + X."""
    x = x_ref[0]                                        # (C, hw_chunk) f32
    out = jnp.dot(att_ref[0], x.astype(compute_dtype),
                  preferred_element_type=jnp.float32)
    o_ref[0] = (out + x).astype(o_ref.dtype)


# ---------------------------------------------------------------------------
# Wrapper
# ---------------------------------------------------------------------------

def _round_up(x, m):
    return -(-x // m) * m


def _vmem_capacity_bytes():
    try:
        info = pltpu.get_tpu_info()
        cap = getattr(info, "vmem_capacity_bytes", None)
        if cap:
            return int(cap)
    except Exception:
        pass
    return 64 * 1024 * 1024   # conservative: v7x has the smallest VMEM


def _pick_hw_chunk(hw128, c, target_bytes):
    """Lane-dense (multiple-of-128) HW chunk with C*chunk*4 ~<= target."""
    max_chunk = max(128, min(hw128, (target_bytes // (c * 4)) // 128 * 128))
    if hw128 <= max_chunk:
        return hw128
    best = 128
    for chunk in range(128, max_chunk + 1, 128):
        if hw128 % chunk == 0:
            best = chunk
    if best * 4 >= max_chunk:          # a divisor reasonably close to target
        return best
    return max_chunk                   # caller zero-pads HW up to a multiple


def fam_module(x, gamma, *, compute_dtype=jnp.bfloat16, approx_recip=True,
               hw_chunk=None, force_streaming=False):
    """Forward pass of FAM_Module.  x: (B, C, H, W); gamma: scalar parameter."""
    B, C, H, W = x.shape
    HW = H * W

    x_flat = x.reshape(B, C, HW).astype(jnp.float32)
    gamma_arr = jnp.asarray(gamma, jnp.float32).reshape(1,)

    vmem_cap = _vmem_capacity_bytes()
    vmem_budget = int(0.85 * vmem_cap)        # headroom, esp. v7x (64 MiB)

    hw128 = _round_up(HW, 128)
    slab_bytes = C * hw128 * 4
    # 2x in + 2x out (double-buffered) + compute-dtype copy + f32 matmul temp,
    # plus a few C^2 f32 temporaries and fixed headroom.
    single_need = 6 * slab_bytes + 4 * C * C * 4 + (2 << 20)

    use_single_pass = (not force_streaming and hw_chunk is None
                       and single_need <= vmem_budget)

    if use_single_pass:
        x_pad = x_flat if hw128 == HW else jnp.pad(
            x_flat, ((0, 0), (0, 0), (0, hw128 - HW)))
        kernel = functools.partial(_fam_single_pass_kernel,
                                   compute_dtype=compute_dtype,
                                   approx_recip=approx_recip)
        params = dict(dimension_semantics=("parallel",))
        if single_need > 16 * 1024 * 1024:
            params["vmem_limit_bytes"] = int(min(single_need, vmem_budget))
        out_flat = pl.pallas_call(
            kernel,
            out_shape=jax.ShapeDtypeStruct((B, C, hw128), jnp.float32),
            grid_spec=pltpu.PrefetchScalarGridSpec(
                num_scalar_prefetch=0,
                grid=(B,),
                in_specs=[
                    pl.BlockSpec(memory_space=pltpu.MemorySpace.SMEM),  # gamma
                    pl.BlockSpec((1, C, hw128), lambda b: (b, 0, 0)),   # x slab
                ],
                out_specs=pl.BlockSpec((1, C, hw128), lambda b: (b, 0, 0)),
            ),
            compiler_params=pltpu.CompilerParams(**params),
        )(gamma_arr, x_pad)
        return out_flat[:, :, :HW].reshape(B, C, H, W)

    # ---- streaming path: two pallas_calls ---------------------------------
    target_block = (4 * 1024 * 1024 if vmem_cap >= 96 * 1024 * 1024
                    else 2 * 1024 * 1024)
    if hw_chunk is None:
        hw_chunk = _pick_hw_chunk(hw128, C, target_block)
    assert hw_chunk % 128 == 0, "hw_chunk must be a multiple of 128"
    hw_pad = _round_up(HW, hw_chunk)
    n_chunks = hw_pad // hw_chunk
    x_pad = x_flat if hw_pad == HW else jnp.pad(
        x_flat, ((0, 0), (0, 0), (0, hw_pad - HW)))

    block_bytes = C * hw_chunk * 4
    cc_bytes = C * C * 4
    stream_need = 6 * block_bytes + 6 * cc_bytes + (2 << 20)
    extra = {}
    if stream_need > 16 * 1024 * 1024:
        extra["vmem_limit_bytes"] = int(min(stream_need, vmem_budget))

    # Call 1: Gram-matrix accumulation + softmax -> tiny (B, C, C) attention
    # (gamma already folded in), in the MXU operand dtype.
    gram_kernel = functools.partial(_fam_gram_kernel,
                                    compute_dtype=compute_dtype,
                                    approx_recip=approx_recip)
    attention = pl.pallas_call(
        gram_kernel,
        out_shape=jax.ShapeDtypeStruct((B, C, C), compute_dtype),
        grid_spec=pltpu.PrefetchScalarGridSpec(
            num_scalar_prefetch=0,
            grid=(B, n_chunks),
            in_specs=[
                pl.BlockSpec(memory_space=pltpu.MemorySpace.SMEM),       # gamma
                pl.BlockSpec((1, C, hw_chunk), lambda b, k: (b, 0, k)),  # x slab
            ],
            out_specs=pl.BlockSpec((1, C, C), lambda b, k: (b, 0, 0)),
            scratch_shapes=[pltpu.VMEM((C, C), jnp.float32)],
        ),
        compiler_params=pltpu.CompilerParams(
            dimension_semantics=("parallel", "arbitrary"), **extra),
    )(gamma_arr, x_pad)

    # Call 2: apply attention + residual; both grid axes independent, so both
    # are "parallel" (gives a second core-parallel axis for B=1 on v7x).
    apply_kernel = functools.partial(_fam_apply_kernel,
                                     compute_dtype=compute_dtype)
    out_flat = pl.pallas_call(
        apply_kernel,
        out_shape=jax.ShapeDtypeStruct((B, C, hw_pad), jnp.float32),
        grid_spec=pltpu.PrefetchScalarGridSpec(
            num_scalar_prefetch=0,
            grid=(B, n_chunks),
            in_specs=[
                pl.BlockSpec((1, C, C), lambda b, k: (b, 0, 0)),         # att
                pl.BlockSpec((1, C, hw_chunk), lambda b, k: (b, 0, k)),  # x slab
            ],
            out_specs=pl.BlockSpec((1, C, hw_chunk), lambda b, k: (b, 0, k)),
        ),
        compiler_params=pltpu.CompilerParams(
            dimension_semantics=("parallel", "parallel"), **extra),
    )(attention, x_pad)
    return out_flat[:, :, :HW].reshape(B, C, H, W)


# ---------------------------------------------------------------------------
# Pure-JAX references
# ---------------------------------------------------------------------------

def _fam_reference(x, gamma):
    """f32 reference matching the PyTorch forward exactly."""
    B, C, H, W = x.shape
    q = x.reshape(B, C, H * W)
    energy = jnp.einsum("bcn,bdn->bcd", q, q,
                        precision=lax.Precision.HIGHEST)
    energy_new = jnp.max(energy, axis=-1, keepdims=True) - energy
    attention = jax.nn.softmax(energy_new, axis=-1)
    out = jnp.einsum("bcd,bdn->bcn", attention, q,
                     precision=lax.Precision.HIGHEST).reshape(B, C, H, W)
    return gamma * out + x


def _fam_reference_lowp(x, gamma, compute_dtype=jnp.bfloat16):
    """Reference with the same bf16-operand / f32-accumulate numerics and the
    same gamma folding as the optimized kernel path."""
    B, C, H, W = x.shape
    q = x.reshape(B, C, H * W)
    qc = q.astype(compute_dtype)
    energy = jnp.einsum("bcn,bdn->bcd", qc, qc,
                        preferred_element_type=jnp.float32)
    e = jnp.exp(jnp.min(energy, axis=-1, keepdims=True) - energy)
    att = (gamma * e) / jnp.sum(e, axis=-1, keepdims=True)
    out = jnp.einsum("bcd,bdn->bcn", att.astype(compute_dtype), qc,
                     preferred_element_type=jnp.float32).reshape(B, C, H, W)
    return out + x


# ---------------------------------------------------------------------------
# Self-test
# ---------------------------------------------------------------------------

if __name__ == "__main__":
    key = jax.random.PRNGKey(0)
    B, C, H, W = 2, 4, 16, 16
    x = jax.random.normal(key, (B, C, H, W), dtype=jnp.float32)
    gamma = jnp.float32(0.5)

    ref_f32 = _fam_reference(x, gamma)
    ref_lowp = _fam_reference_lowp(x, gamma)

    # 1) Default path (single-pass, bf16 MXU operands, approx reciprocal).
    out_sp = jax.block_until_ready(fam_module(x, gamma))
    assert out_sp.shape == (B, C, H, W)
    assert jnp.allclose(out_sp, ref_lowp, atol=2e-2, rtol=2e-2), \
        "single-pass bf16 path mismatch vs matched-precision reference"

    # 2) Streaming path (explicit lane-dense 128-wide chunks), same numerics.
    out_st = jax.block_until_ready(fam_module(x, gamma, hw_chunk=128))
    assert jnp.allclose(out_st, ref_lowp, atol=2e-2, rtol=2e-2), \
        "streaming bf16 path mismatch vs matched-precision reference"

    # 3) Precise paths (f32 MXU operands + exact reciprocal) vs exact forward.
    out_prec_sp = jax.block_until_ready(
        fam_module(x, gamma, compute_dtype=jnp.float32, approx_recip=False))
    assert jnp.allclose(out_prec_sp, ref_f32, atol=2e-3, rtol=2e-3), \
        "precise single-pass mismatch vs f32 reference"
    out_prec_st = jax.block_until_ready(
        fam_module(x, gamma, compute_dtype=jnp.float32, approx_recip=False,
                   hw_chunk=128))
    assert jnp.allclose(out_prec_st, ref_f32, atol=2e-3, rtol=2e-3), \
        "precise streaming mismatch vs f32 reference"

    # 4) Non-multiple-of-128 spatial size exercises the zero-padding path.
    x2 = jax.random.normal(jax.random.PRNGKey(1), (1, 8, 9, 9), jnp.float32)
    out_pad = jax.block_until_ready(fam_module(x2, gamma))
    assert jnp.allclose(out_pad, _fam_reference_lowp(x2, gamma),
                        atol=2e-2, rtol=2e-2), "padded-HW path mismatch"
    out_pad_st = jax.block_until_ready(fam_module(x2, gamma, hw_chunk=128))
    assert jnp.allclose(out_pad_st, _fam_reference_lowp(x2, gamma),
                        atol=2e-2, rtol=2e-2), "padded-HW streaming mismatch"

    # 5) gamma == 0 (the module's init value) must return x exactly.
    out_zero = jax.block_until_ready(fam_module(x, jnp.float32(0.0)))
    assert jnp.array_equal(out_zero, x), "gamma=0 path must be identity"

    print("KERNEL_OK")
</pallas_src>

<mosaic_0001>
module attributes {stable_mosaic.version = 11 : i64} {
  func.func @_fam_single_pass_kernel(%arg0: i32, %arg1: memref<1xf32, #tpu.memory_space<smem>>, %arg2: memref<1x4x256xf32, #tpu.memory_space<vmem>>, %arg3: memref<1x4x256xf32, #tpu.memory_space<vmem>>) attributes {dimension_semantics = [#tpu.dimension_semantics<parallel>], iteration_bounds = array<i64: 2>, scalar_prefetch = 0 : i64, scratch_operands = 0 : i64, tpu.core_type = #tpu.core_type<tc>, window_params = [{transform_indices = @transform_0, window_bounds = array<i64: 1>}, {transform_indices = @transform_1, window_bounds = array<i64: 1, 4, 256>}, {transform_indices = @transform_2, window_bounds = array<i64: 1, 4, 256>}]} {
    %c0 = arith.constant 0 : index
    %c0_0 = arith.constant 0 : index
    %c0_1 = arith.constant 0 : index
    %0 = vector.load %arg2[%c0, %c0_0, %c0_1] : memref<1x4x256xf32, #tpu.memory_space<vmem>>, vector<1x4x256xf32>
    %1 = vector.shape_cast %0 : vector<1x4x256xf32> to vector<4x256xf32>
    %2 = arith.truncf %1 : vector<4x256xf32> to vector<4x256xbf16>
    %cst = arith.constant dense<0.000000e+00> : vector<4x4xf32>
    %3 = tpu.matmul %2, %2, %cst {dimension_numbers = #tpu.dot_dimension_numbers<[1], [1], [0], [0], [0, 0, 1, 0], [], []>} : vector<4x256xbf16>, vector<4x256xbf16>, vector<4x4xf32> -> vector<4x4xf32>
    %cst_2 = arith.constant dense<0x7F800000> : vector<4xf32>
    %4 = vector.multi_reduction <minimumf>, %3, %cst_2 [1] : vector<4x4xf32> to vector<4xf32>
    %5 = vector.shape_cast %4 : vector<4xf32> to vector<4x1xf32>
    %6 = vector.broadcast %5 : vector<4x1xf32> to vector<4x4xf32>
    %7 = arith.subf %6, %3 : vector<4x4xf32>
    %8 = math.exp %7 : vector<4x4xf32>
    %cst_3 = arith.constant dense<0.000000e+00> : vector<4xf32>
    %9 = vector.multi_reduction <add>, %8, %cst_3 [1] : vector<4x4xf32> to vector<4xf32>
    %10 = vector.shape_cast %9 : vector<4xf32> to vector<4x1xf32>
    %c0_4 = arith.constant 0 : index
    %11 = memref.load %arg1[%c0_4] : memref<1xf32, #tpu.memory_space<smem>>
    %12 = vector.broadcast %11 : f32 to vector<4x4xf32>
    %13 = arith.mulf %12, %8 : vector<4x4xf32>
    %14 = tpu.reciprocal %10 {approx = true} : vector<4x1xf32> -> vector<4x1xf32>
    %15 = vector.broadcast %14 : vector<4x1xf32> to vector<4x4xf32>
    %16 = arith.mulf %13, %15 : vector<4x4xf32>
    %17 = arith.truncf %16 : vector<4x4xf32> to vector<4x4xbf16>
    %cst_5 = arith.constant dense<0.000000e+00> : vector<4x256xf32>
    %18 = tpu.matmul %17, %2, %cst_5 {dimension_numbers = #tpu.dot_dimension_numbers<[1], [0], [0], [1], [0, 0, 1, 1], [], []>} : vector<4x4xbf16>, vector<4x256xbf16>, vector<4x256xf32> -> vector<4x256xf32>
    %19 = arith.addf %18, %1 : vector<4x256xf32>
    %c0_6 = arith.constant 0 : index
    %c0_7 = arith.constant 0 : index
    %c0_8 = arith.constant 0 : index
    %20 = vector.load %arg3[%c0_6, %c0_7, %c0_8] : memref<1x4x256xf32, #tpu.memory_space<vmem>>, vector<1x4x256xf32>
    %21 = vector.shape_cast %20 : vector<1x4x256xf32> to vector<4x256xf32>
    %22 = vector.shape_cast %19 : vector<4x256xf32> to vector<1x4x256xf32>
    tpu.vector_store %arg3[%c0_6, %c0_7, %c0_8], %22 {strides = array<i32>} : memref<1x4x256xf32, #tpu.memory_space<vmem>>, vector<1x4x256xf32>,
    return
  }
  func.func @transform_0(%arg0: i32) -> i32 {
    %c0_i32 = arith.constant 0 : i32
    %c0_i32_0 = arith.constant 0 : i32
    return %c0_i32 : i32
  }
  func.func @transform_1(%arg0: i32) -> (i32, i32, i32) {
    %c0_i32 = arith.constant 0 : i32
    %c0_i32_0 = arith.constant 0 : i32
    %c0_i32_1 = arith.constant 0 : i32
    return %arg0, %c0_i32, %c0_i32_0 : i32, i32, i32
  }
  func.func @transform_2(%arg0: i32) -> (i32, i32, i32) {
    %c0_i32 = arith.constant 0 : i32
    %c0_i32_0 = arith.constant 0 : i32
    %c0_i32_1 = arith.constant 0 : i32
    return %arg0, %c0_i32, %c0_i32_0 : i32, i32, i32
  }
}

</mosaic_0001>

<bundles_post_ra>
// kernel: tpu_custom_call.1
= control target key start
LH: loop header
LB: loop body
LE: loop exit
PB: predicated region body
PF: predicated region fallthrough
CT: control target
= control target key end

     0   :  { %s720_s0 = inlined_call_operand.<no memory space> [shape: f32[1], index: 0, kind: input, shape index: {}]   ;;  %s721_s1 = inlined_call_operand.hbm [shape: f32[2,4,256], index: 1, kind: input, shape index: {}]   ;;  %s722_s2 = inlined_call_operand.hbm [shape: f32[2,4,256], index: 2, kind: output, shape index: {}]  }
   0x1   :  { %7 = sst [smem:[#allocation2]] %s720_s0 }
   0x2   :  { %8 = vsyncpa [#allocation4], 0 }
   0x3   :  { %10 = vsyncpa [#allocation4 + $0x1], 0 }
   0x4   :  { %11 = vsyncpa [#allocation5], 0 }
   0x5   :  { %13 = vsyncpa [#allocation5 + $0x1], 0  ;;  %s555_s11 = smov 0   ;;  %s557_s12 = smov 0  }
   0x6   :  { %s559_s13 = smov 0   ;;  %s561_s14 = smov 0  }
   0x7 LB: > { %s576_s0 = sadd.s32 4294967295, %s532_s14   ;;  %s366_s15 = sadd.s32 4294967294, %s532_s14   ;;  %s532_s14 = sphi %s561_s14, %s737_s14   ;;  %s528_s13 = sphi %s559_s13, %s736_s13   ;;  %s524_s12 = sphi %s557_s12, %s735_s12   ;;  %s520_s11 = sphi %s555_s11, %s734_s11  }
   0x8   : > { %s580_s16 = sadd.s32 1, %s532_s14   ;;  %s47_s17 = sadd.s32 1, %s528_s13 }
   0x9   : > { %s44_s18 = ssub.s32 %s532_s14, %s580_s16  ;;  %p54_p0 = scmp.ne.s32.totalorder %s528_s13, %s524_s12 }
   0xa   : > { %p45_p1 = scmp.eq.s32.totalorder %s44_s18, 0  ;;  %p55_p2 = scmp.eq.s32.totalorder %s532_s14, 0 }
   0xb   : > { %p60_p3 = scmp.ne.s32.totalorder %s524_s12, %s520_s11  ;;  %p61_p4 = scmp.eq.s32.totalorder %s576_s0, 0 }
   0xc   : > { %s592_s19 = scalar_select %p45_p1, %s528_s13, %s47_s17  }
   0xd   : > { %p594_p5 = por %p55_p2, %p54_p0  ;;  %p598_p6 = por %p61_p4, %p60_p3 }
   0xe   : > { %p84_p7 = scmp.eq.s32.totalorder %s576_s0, 1  ;;  %p90_p8 = scmp.eq.s32.totalorder %s366_s15, 1 }
   0xf   : > { %p396_p10 = scmp.lt.s32.totalorder %s532_s14, 2  ;;  %s113_s24 = sand.u32 1, %s528_s13  }
  0x10   : > { %p605_p11 = por %p84_p7, %p54_p0  ;;  %p609_p12 = por %p90_p8, %p60_p3 }
  0x11   : > { %s382_s25 = sshll.u32 %s532_s14, 7  ;;  %s369_s26 = sshll.u32 %s113_s24, 3 }
  0x12   : > { %s726_s22 = scalar_select %p605_p11, 1, 0 }
  0x13   : > { %s727_s23 = scalar_select %p609_p12, 1, 0 }
  0x14   : > { %s618_s29 = scalar_lea.hbm %s721_s1, %s382_s25  ;;  %s117_s30 = scalar_lea.vmem [#allocation3], %s369_s26 }
  0x15   : > { %s125_s3 = sshll.u32 %s117_s30, 4  ;;  %p622_p13 = pnand %p396_p10, %p594_p5  ;;  %s626_s3 = int_to_ptr.vmem [resolvable:$true] %s125_s3 }
  0x16   : > { %s114_s5 = scalar_lea.sflag [#allocation4], %s113_s24  ;;  %s436_s6 = scalar_lea.hbm %s618_s29, 128 }
  0x17   : > { %p437_p2 = scmp.ne.s32.totalorder %s618_s29, %s436_s6  ;;  %p438_p3 = pneg %p622_p13 }
  0x18   : > { %s441_s9 = scalar_lea.hbm %s721_s1, 256  ;;  %p442_p5 = scmp.lt.u32.totalorder %s618_s29, %s721_s1 }
  0x19   : > { %p439_p4 = pnand %p438_p3, %p437_p2  ;;  %p443_p8 = scmp.lt.u32.totalorder %s441_s9, %s436_s6 }
  0x1a   : > { %p445_p9 = scmp.lt.u32.totalorder %s436_s6, %s618_s29 }
  0x1b   : > { %p440_p7 = pneg %p439_p4  ;;  %p444_p10 = por %p443_p8, %p442_p5 }
  0x1d   : > { %p446_p0 = por %p445_p9, %p444_p10 }
  0x1f   : > { %p447_p1 = pnand %p446_p0, %p440_p7 }
  0x21   : > { %450 = shalt.err (!%p447_p1)
}
  0x22   : > { %s451_s17 = scalar_lea.vmem %s626_s3, 128  ;;  %s534_s18 = smov [#allocation3]  }
  0x23   : > { %p452_p2 = scmp.ne.s32.totalorder %s626_s3, %s451_s17  ;;  %s456_s20 = sshll.u32 %s534_s18, 4  ;;  %s457_s20 = int_to_ptr.vmem [resolvable:$false] %s456_s20 }
  0x24   : > { %s458_s24 = scalar_lea.vmem %s457_s20, 256  ;;  %p459_p11 = scmp.lt.s32.totalorder %s626_s3, %s457_s20 }
  0x25   : > { %p454_p4 = pnand %p452_p2, %p438_p3  ;;  %p460_p5 = scmp.lt.s32.totalorder %s458_s24, %s451_s17 }
  0x27   : > { %p455_p12 = pneg %p454_p4  ;;  %p461_p8 = por %p460_p5, %p459_p11 }
  0x29   : > { %p462_p9 = pnand %p461_p8, %p455_p12 }
  0x2b   : > { %465 = shalt.err (!%p462_p9)
}
  0x2c   : > { %391 = dma.hbm_to_vmem [thread:$0]  (!%p622_p13), %s618_s29, 128, %s626_s3, %s114_s5  }
  0x2d   : > { %p729_p0 = scmp.lt.s32.totalorder %s532_s14, 3  ;;  %p730_p1 = scmp.ge.s32.totalorder %s532_s14, 1 }
  0x2f   : > { %p131_p3 = pnand %p730_p1, %p729_p0 }
  0x30   : > { %s660_s25 = sand.u32 (!%p131_p3), 1, %s524_s12  }
  0x31   : > { %134 = sbr.rel (%p131_p3) target bundleno = 829 (0x33d), region = 28  ;;  %s373_s26 = sshll.u32 (!%p131_p3), %s660_s25, 3 }
  0x32   : > { %s137_s27 = scalar_lea.sflag (!%p131_p3), [#allocation4], %s660_s25  ;;  %s140_s28 = scalar_lea.vmem (!%p131_p3), [#allocation3], %s373_s26 }
  0x38   : > { %511 = dma.done.wait (%p598_p6), %s137_s27, 128  }
  0x39   : > { %513 = vsyncadd (%p598_p6), %s137_s27, 4294967168  ;;  %v162_v0 = vld [vmem:[%s140_s28] sm:$0xff]  ;;  %vm208_vm0 = vcmask 27648   ;;  %vm228_vm1 = vcmask 1041408   ;;  %v535_v15 = vmov 0   ;;  %s218_s21 = sld [smem:[#allocation2]] }
  0x3a   : > { %v164_v1 = vcombine.high %v162_v0, %v162_v0  ;;  %v166_v2 = vpack.c.bf16 %v162_v0, %v162_v0  ;;  %267 = vmatprep.mubr.bf16.mxu1 %v535_v15  ;;  %vm224_vm2 = vcmask 31744   ;;  %s383_s29 = sshll.u32 %s576_s0, 7  ;;  %s160_s30 = scalar_lea.vmem [#allocation6], %s373_s26 }
  0x3b   : > { %s296_s3 = sshll.u32 %s160_s30, 4  ;;  %s676_s6 = scalar_lea.hbm %s722_s2, %s383_s29  ;;  %s678_s3 = int_to_ptr.vmem [resolvable:$true] %s296_s3 }
  0x3c   : > { %v167_v3 = vpack.c.bf16 %v164_v1, %v164_v1  ;;  %v230_v14 = vsel %vm228_vm1, %v166_v2, 0  ;;  %s282_s7 = scalar_lea.sflag [#allocation5], %s660_s25  ;;  %s466_s0 = scalar_lea.vmem %s678_s3, 128 }
  0x3d   : > { %p467_p6 = scmp.ne.s32.totalorder %s678_s3, %s466_s0  ;;  %p731_p11 = scmp.ne.s32.totalorder %s726_s22, 0 }
  0x3e   : > { %168 = vmatprep.subr.bf16.mxu0 %v167_v3  ;;  %200 = vmatprep.mubr.bf16.mxu0 %v167_v3  ;;  %s536_s8 = smov [#allocation6]  }
  0x3f   : > { %169 = vmatpush1.bf16.xpose.msra.mxu0 %v166_v2  ;;  %375 = vmatprep.subr.msk.bf16.mxu1 %vm228_vm1, %v167_v3  ;;  %v219_v17 = vstv %s218_s21  ;;  %p468_p12 = pnand %p467_p6, %p731_p11  ;;  %s470_s9 = sshll.u32 %s536_s8, 4  ;;  %s471_s9 = int_to_ptr.vmem [resolvable:$false] %s470_s9 }
  0x40   : > { %236 = vmatpush1.bf16.msra.mxu1 %v230_v14  ;;  %s472_s10 = scalar_lea.vmem %s471_s9, 256  ;;  %p473_p7 = scmp.lt.s32.totalorder %s678_s3, %s471_s9 }
  0x41   : > { %p469_p13 = pneg %p468_p12  ;;  %p474_p10 = scmp.lt.s32.totalorder %s472_s10, %s466_s0 }
  0x43   : > { %p475_p2 = por %p474_p10, %p473_p7 }
  0x45   : > { %p476_p4 = pnand %p475_p2, %p469_p13 }
  0x46   : > { %201 = vmatmul.mubr.bf16.vlgmr.msra.gmra.mrb[0].mxu0 %v166_v2 }
 0x119   : > { %v202_v4 = vpop.f32.mrb[0].mxu0 }
 0x11a   : > { %v204_v5 = vpop.f32.mrb[1].mxu0  ;;  %v209_v6 = vsel %vm208_vm0, %v202_v4, inf }
 0x11b   : > { %210 = vmin.xlane.f32.xlu0 %v209_v6  ;;  %v205_v7 = vpop.f32.mrb[2].mxu0 }
 0x11c   : > { %v206_v8 = vpop.f32.mrb[3].mxu0 }
 0x1a8   : > { %v211_v9 = vpop.xlane.xlu0 %210 }
 0x1a9   : > { %v212_v10 = vsub.f32 %v211_v9, %v202_v4 }
 0x1ab   : > { %v213_v11 = vmul.f32 1.442695, %v212_v10 }
 0x1ad   : > { %432 = vpow2.f32 %v213_v11 }
 0x1b7   : > { %v433_v12 = vpop.eup %432 }
 0x1b8   : > { %v215_v13 = vsel %vm208_vm0, %v433_v12, 0.0  ;;  %v220_v18 = vmul.f32 %v433_v12, %v219_v17 }
 0x1b9   : > { %216 = vadd.xlane.f32.xlu0 %v215_v13 }
 0x246   : > { %v217_v16 = vpop.xlane.xlu0 %216 }
 0x247   : > { %434 = vrcp.f32 %v217_v16 }
 0x251   : > { %v435_v19 = vpop.eup %434 }
 0x252   : > { %v222_v20 = vmul.f32 %v435_v19, %v220_v18 }
 0x254   : > { %v223_v21 = vpack.c.bf16 %v222_v20, %v222_v20 }
 0x256   : > { %376 = vmatmul.mubr.msk.bf16.vlgmr.msra.gmra.mrb[0].mxu1 %vm224_vm2, %v223_v21 }
 0x329   : > { %v269_v22 = vpop.f32.mrb[0].mxu1 }
 0x32a   : > { %v270_v23 = vadd.f32 %v269_v22, %v162_v0  ;;  %v271_v24 = vpop.f32.mrb[1].mxu1 }
 0x32b   : > { %v272_v25 = vadd.f32 %v271_v24, %v164_v1  ;;  %v273_v26 = vpop.f32.mrb[2].mxu1 }
 0x32c   : > { %v274_v27 = vpop.f32.mrb[3].mxu1 }
 0x32d   : > { %v278_v28 = vcombine.low %v270_v23, %v272_v25 }
 0x32f   : > { %280 = vst [vmem:[%s160_s30] sm:$0xff] %v278_v28 }
 0x330   : > { %479 = shalt.err (!%p476_p4)
}
 0x331   : > { %s480_s15 = scalar_lea.hbm %s676_s6, 128  ;;  %s484_s20 = scalar_lea.hbm %s722_s2, 256 }
 0x332   : > { %p481_p5 = scmp.ne.s32.totalorder %s676_s6, %s480_s15  ;;  %p485_p0 = scmp.lt.u32.totalorder %s676_s6, %s722_s2 }
 0x333   : > { %p486_p1 = scmp.lt.u32.totalorder %s484_s20, %s480_s15  ;;  %p488_p6 = scmp.lt.u32.totalorder %s480_s15, %s676_s6 }
 0x334   : > { %p482_p8 = pnand %p481_p5, %p731_p11 }
 0x335   : > { %p487_p3 = por %p486_p1, %p485_p0 }
 0x336   : > { %p483_p9 = pneg %p482_p8 }
 0x337   : > { %p489_p12 = por %p488_p6, %p487_p3 }
 0x339   : > { %p490_p13 = pnand %p489_p12, %p483_p9 }
 0x33b   : > { %493 = shalt.err (!%p490_p13)
}
 0x33c   : > { %386 = dma.vmem_to_hbm [thread:$0]  (%p731_p11), %s678_s3, 128, %s676_s6, %s282_s7  }
 0x33d PF: > { %s308_s26 = sand.u32 1, %s520_s11   ;;  %p732_p7 = scmp.ne.s32.totalorder %s727_s23, 0 }
 0x33e   : > { %p733_p10 = scmp.ge.s32.totalorder %s532_s14, 2  ;;  %s309_s27 = scalar_lea.sflag [#allocation5], %s308_s26 }
 0x340   : > { %p393_p2 = pnand %p733_p10, %p732_p7 }
 0x342   : > { %515 = dma.done.wait (!%p393_p2), %s309_s27, 128  }
 0x343   : > { %517 = vsyncadd (!%p393_p2), %s309_s27, 4294967168  ;;  %p16_p4 = scmp.ge.s32.totalorder %s580_s16, 4   ;;  %s734_s11 = smov %s524_s12 }
 0x344   : > { %s735_s12 = smov %s528_s13  ;;  %s736_s13 = smov %s592_s19 }
 0x345   : > { %s737_s14 = smov %s580_s16  ;;  %18 = sbr.rel (!%p16_p4) target bundleno = 7 (0x7), region = 73 }
 0x34c   :  { %314 = vsyncpa [#allocation4], 1 }
 0x34d   :  { %316 = vsyncpa [#allocation4 + $0x1], 1 }
 0x34e   :  { %317 = vsyncpa [#allocation5], 1 }
 0x34f   :  { %319 = vsyncpa [#allocation5 + $0x1], 1 }

</bundles_post_ra>
